<compile_context>
chip_gen: v7x
topology: tpu7x:2x2x1
jax: 0.10.0
libtpu: 0.0.40
codegen_flags: <defaults>
</compile_context>

<pallas_src>
import math
import jax
import jax.numpy as jnp
from jax.experimental import pallas as pl
from jax.experimental.pallas import tpu as pltpu


def _posenc_kernel(x_ref, w_ref, o_ref):
    # x_ref: (TN, n_dim+1)   coordinate tile with a trailing ones column
    # w_ref: (n_dim+1, d_pad) frequency matrix + pi/2 cos-bias row
    # o_ref: (TN, d_pad)     lane-dense output tile
    phase = jnp.dot(
        x_ref[...], w_ref[...],
        preferred_element_type=jnp.float32,
        precision=jax.lax.Precision.HIGHEST,
    )
    o_ref[...] = jnp.sin(phase).astype(o_ref.dtype)


class PositionEmbeddingCoordsSine:
    """JAX/Pallas port of the PyTorch module (forward pass only)."""

    def __init__(self, n_dim: int = 3, d_model: int = 256,
                 temperature: int = 10000, scale=None,
                 out_dtype=jnp.float32):
        self.n_dim = n_dim
        self.d_model = d_model
        self.num_pos_feats = d_model // n_dim // 2 * 2
        self.temperature = temperature
        self.padding = d_model - self.num_pos_feats * n_dim
        if scale is None:
            scale = 1.0
        self.scale = scale * 2 * math.pi
        self.out_dtype = out_dtype          # bf16 is a further 2x on writeback

        npf = self.num_pos_feats
        # Lane-dense output width (multiple of 128) -> unmasked stores.
        self.d_pad = max(128, pl.cdiv(d_model, 128) * 128)

        j = jnp.arange(npf, dtype=jnp.float32)
        # temperature ** (2 * (j // 2) / npf)
        dim_t = jnp.asarray(temperature, jnp.float32) ** (
            2.0 * jnp.floor(j / 2.0) / npf)
        coeff = self.scale / dim_t                                  # (npf,)

        # W: per-coordinate frequencies + a bias row (pi/2 on cos slots).
        w = jnp.zeros((n_dim + 1, self.d_pad), dtype=jnp.float32)
        bias = jnp.zeros((self.d_pad,), dtype=jnp.float32)
        for d in range(n_dim):
            w = w.at[d, d * npf:(d + 1) * npf].set(coeff)
            bias = bias.at[d * npf + 1:(d + 1) * npf:2].set(math.pi / 2.0)
        w = w.at[n_dim, :].set(bias)
        self.W = w                                                  # (n_dim+1, d_pad)

    def __call__(self, xyz: jax.Array) -> jax.Array:
        assert xyz.shape[-1] == self.n_dim
        lead = xyz.shape[:-1]
        x = xyz.reshape(-1, self.n_dim).astype(jnp.float32)
        n = x.shape[0]
        k = self.n_dim + 1
        d_pad = self.d_pad

        # Trailing ones column lets the MXU add the pi/2 cos-phase bias for free.
        x = jnp.concatenate([x, jnp.ones((n, 1), jnp.float32)], axis=-1)

        # Row tile: multiple of 8 sublanes, up to 1024 rows (kernel is
        # HBM-write bound; bigger tiles amortize the ~0.35us grid-step cost),
        # capped so a double-buffered output tile stays well inside VMEM on
        # every generation (v7x has only 64 MiB).
        vmem_cap_rows = max(256, ((4 << 20) // (d_pad * 4)) // 8 * 8)
        tn = min(1024, vmem_cap_rows, max(8, pl.cdiv(n, 8) * 8))
        grid = (pl.cdiv(n, tn),)   # boundary block is truncated by Pallas

        out_bytes = n * d_pad * jnp.dtype(self.out_dtype).itemsize
        out = pl.pallas_call(
            _posenc_kernel,
            out_shape=jax.ShapeDtypeStruct((n, d_pad), self.out_dtype),
            grid=grid,
            in_specs=[
                pl.BlockSpec((tn, k), lambda i: (i, 0)),
                pl.BlockSpec((k, d_pad), lambda i: (0, 0)),
            ],
            out_specs=pl.BlockSpec((tn, d_pad), lambda i: (i, 0)),
            compiler_params=pltpu.CompilerParams(
                dimension_semantics=("parallel",)),
            cost_estimate=pl.CostEstimate(
                flops=2 * n * d_pad * k,
                transcendentals=n * d_pad,
                bytes_accessed=4 * n * k + 4 * k * d_pad + out_bytes),
        )(x, self.W)

        if d_pad != self.d_model:
            out = out[:, :self.d_model]
        return out.reshape(*lead, self.d_model)


def _reference(xyz, n_dim, d_model, temperature=10000, scale=None):
    """Pure-JAX replica of the PyTorch forward for verification."""
    num_pos_feats = d_model // n_dim // 2 * 2
    padding = d_model - num_pos_feats * n_dim
    if scale is None:
        scale = 1.0
    scale = scale * 2 * math.pi
    j = jnp.arange(num_pos_feats, dtype=jnp.float32)
    dim_t = jnp.asarray(temperature, jnp.float32) ** (
        2.0 * jnp.floor(j / 2.0) / num_pos_feats)
    xyz = xyz.astype(jnp.float32) * scale
    pos_divided = xyz[..., None] / dim_t
    pos_sin = jnp.sin(pos_divided[..., 0::2])
    pos_cos = jnp.cos(pos_divided[..., 1::2])
    pos_emb = jnp.stack([pos_sin, pos_cos], axis=-1).reshape(*xyz.shape[:-1], -1)
    pad_cfg = [(0, 0)] * (pos_emb.ndim - 1) + [(0, padding)]
    return jnp.pad(pos_emb, pad_cfg)


if __name__ == "__main__":
    key = jax.random.PRNGKey(0)

    # Case 1: small d_model with padding columns (num_pos_feats=10, padding=2).
    n_dim, d_model = 3, 32
    xyz = jax.random.uniform(key, (2, 16, n_dim), dtype=jnp.float32)
    module = PositionEmbeddingCoordsSine(n_dim=n_dim, d_model=d_model)
    out = jax.block_until_ready(module(xyz))
    ref = _reference(xyz, n_dim, d_model)
    assert out.shape == (2, 16, d_model), out.shape
    assert jnp.allclose(out, ref, atol=1e-4, rtol=1e-4), \
        float(jnp.max(jnp.abs(out - ref)))

    # Case 2: default-ish config, lane-dense d_model=256 (no lane slice).
    n_dim2, d_model2 = 3, 256
    xyz2 = jax.random.uniform(jax.random.PRNGKey(1), (4, 8, n_dim2),
                              dtype=jnp.float32)
    module2 = PositionEmbeddingCoordsSine(n_dim=n_dim2, d_model=d_model2)
    out2 = jax.block_until_ready(module2(xyz2))
    ref2 = _reference(xyz2, n_dim2, d_model2)
    assert out2.shape == (4, 8, d_model2), out2.shape
    assert jnp.allclose(out2, ref2, atol=1e-4, rtol=1e-4), \
        float(jnp.max(jnp.abs(out2 - ref2)))

    # Case 3: ragged row count (13 points) -> exercises boundary-block
    # truncation (no host-side padding / slicing of rows).
    n_dim3, d_model3 = 3, 40
    xyz3 = jax.random.uniform(jax.random.PRNGKey(2), (1, 13, n_dim3),
                              dtype=jnp.float32)
    module3 = PositionEmbeddingCoordsSine(n_dim=n_dim3, d_model=d_model3)
    out3 = jax.block_until_ready(module3(xyz3))
    ref3 = _reference(xyz3, n_dim3, d_model3)
    assert out3.shape == (1, 13, d_model3), out3.shape
    assert jnp.allclose(out3, ref3, atol=1e-4, rtol=1e-4), \
        float(jnp.max(jnp.abs(out3 - ref3)))

    print("KERNEL_OK")
</pallas_src>

<mosaic_0001>
module attributes {stable_mosaic.version = 11 : i64} {
  func.func @_posenc_kernel(%arg0: i32, %arg1: memref<32x4xf32, #tpu.memory_space<vmem>>, %arg2: memref<4x128xf32, #tpu.memory_space<vmem>>, %arg3: memref<32x128xf32, #tpu.memory_space<vmem>>) attributes {dimension_semantics = [#tpu.dimension_semantics<parallel>], iteration_bounds = array<i64: 1>, scalar_prefetch = 0 : i64, scratch_operands = 0 : i64, tpu.core_type = #tpu.core_type<tc>, window_params = [{transform_indices = @transform_0, window_bounds = array<i64: 32, 4>}, {pipeline_mode = #tpu.pipeline_mode<synchronous>, transform_indices = @transform_1, window_bounds = array<i64: 4, 128>}, {transform_indices = @transform_2, window_bounds = array<i64: 32, 128>}]} {
    %c0 = arith.constant 0 : index
    %c0_0 = arith.constant 0 : index
    %0 = vector.load %arg1[%c0, %c0_0] : memref<32x4xf32, #tpu.memory_space<vmem>>, vector<32x4xf32>
    %c0_1 = arith.constant 0 : index
    %c0_2 = arith.constant 0 : index
    %1 = vector.load %arg2[%c0_1, %c0_2] : memref<4x128xf32, #tpu.memory_space<vmem>>, vector<4x128xf32>
    %cst = arith.constant dense<0.000000e+00> : vector<32x128xf32>
    %2 = tpu.matmul %0, %1, %cst {dimension_numbers = #tpu.dot_dimension_numbers<[1], [0], [0], [1], [0, 0, 1, 1], [], []>, precision = #tpu.contract_precision<fp32>} : vector<32x4xf32>, vector<4x128xf32>, vector<32x128xf32> -> vector<32x128xf32>
    %3 = math.sin %2 : vector<32x128xf32>
    %c0_3 = arith.constant 0 : index
    %c0_4 = arith.constant 0 : index
    %4 = vector.load %arg3[%c0_3, %c0_4] : memref<32x128xf32, #tpu.memory_space<vmem>>, vector<32x128xf32>
    tpu.vector_store %arg3[%c0_3, %c0_4], %3 {strides = array<i32>} : memref<32x128xf32, #tpu.memory_space<vmem>>, vector<32x128xf32>,
    return
  }
  func.func @transform_0(%arg0: i32) -> (i32, i32) {
    %c0_i32 = arith.constant 0 : i32
    %c0_i32_0 = arith.constant 0 : i32
    return %arg0, %c0_i32 : i32, i32
  }
  func.func @transform_1(%arg0: i32) -> (i32, i32) {
    %c0_i32 = arith.constant 0 : i32
    %c0_i32_0 = arith.constant 0 : i32
    %c0_i32_1 = arith.constant 0 : i32
    return %c0_i32, %c0_i32_0 : i32, i32
  }
  func.func @transform_2(%arg0: i32) -> (i32, i32) {
    %c0_i32 = arith.constant 0 : i32
    %c0_i32_0 = arith.constant 0 : i32
    return %arg0, %c0_i32 : i32, i32
  }
}

</mosaic_0001>

<bundles_post_ra>
// kernel: tpu_custom_call.1
= control target key start
LH: loop header
LB: loop body
LE: loop exit
PB: predicated region body
PF: predicated region fallthrough
CT: control target
= control target key end

     0   :  { %vm30_vm0 = vcmask 1043456   ;;  %vm17_vm1 = vcmask 31744   ;;  %s1547_s0 = inlined_call_operand.vmem [shape: f32[32,4], index: 0, kind: input, shape index: {}]   ;;  %s1548_s1 = inlined_call_operand.vmem [shape: f32[4,128], index: 1, kind: input, shape index: {}]   ;;  %s1549_s2 = inlined_call_operand.hbm [shape: f32[32,128], index: 2, kind: output, shape index: {}]  }
   0x1   :  { %v16_v0 = vld [vmem:[%s1548_s1] sm:$0xf]  ;;  %v13_v2 = vld [vmem:[%s1547_s0 + $0x8] sm:$0xff]  ;;  %v14_v6 = vld [vmem:[%s1547_s0 + $0x10] sm:$0xff] }
   0x2   :  { %v12_v1 = vld [vmem:[%s1547_s0] sm:$0xff]  ;;  %v32_v3 = vsel %vm30_vm0, %v16_v0, 0  ;;  %v22_v5 = vsel %vm17_vm1, %v13_v2, 0  ;;  %v15_v7 = vld [vmem:[%s1547_s0 + $0x18] sm:$0xff]  ;;  %v25_v11 = vsel %vm17_vm1, %v14_v6, 0 }
   0x3   :  { %v19_v4 = vsel %vm17_vm1, %v12_v1, 0  ;;  %v35_v8 = vand.u32 4294901760, %v32_v3  ;;  %v110_v10 = vand.u32 4294901760, %v22_v5 }
   0x4   :  { %v100_v9 = vand.u32 4294901760, %v19_v4 }
   0x5   :  { %7 = vsyncpa [#allocation3], 0  ;;  %v120_v12 = vand.u32 4294901760, %v25_v11  ;;  %v28_v13 = vsel %vm17_vm1, %v15_v7, 0  ;;  %1115 = vmatprep.subr.mxu0 %v35_v8  ;;  %v111_v15 = vsub.f32 %v22_v5, %v110_v10  ;;  %1091 = vmatprep.subr.mxu1 %v35_v8  ;;  %v142_v16 = vsub.f32 %v32_v3, %v35_v8  ;;  %s1230_s0 = smov [#allocation2]  }
   0x6   :  { %v101_v14 = vsub.f32 %v19_v4, %v100_v9  ;;  %v130_v17 = vand.u32 4294901760, %v28_v13  ;;  %1116 = vmatpush3.msra.mxu0 %v35_v8  ;;  %1092 = vmatpush3.msra.mxu1 %v35_v8  ;;  %s1034_s1 = sshll.u32 %s1230_s0, 4  ;;  %s1035_s1 = int_to_ptr.vmem [resolvable:$true] %s1034_s1 }
   0x7   :  { %v121_v18 = vsub.f32 %v25_v11, %v120_v12  ;;  %v112_v20 = vand.u32 4294901760, %v111_v15  ;;  %v143_v21 = vand.u32 4294901760, %v142_v16  ;;  %s1200_s19 = scalar_lea.vmem %s1035_s1, 512  ;;  %p1205_p1 = scmp.lt.s32.totalorder %s1035_s1, %s1035_s1 }
   0x8   :  { %v102_v19 = vand.u32 4294901760, %v101_v14  ;;  %v131_v22 = vsub.f32 %v28_v13, %v130_v17  ;;  %v1225_v13 = vmov 2475754826   ;;  %p1201_p0 = scmp.ne.s32.totalorder %s1035_s1, %s1200_s19  ;;  %p1206_p2 = scmp.lt.s32.totalorder %s1200_s19, %s1200_s19 }
   0x9   :  { %v122_v23 = vand.u32 4294901760, %v121_v18  ;;  %v144_v25 = vsub.f32 %v142_v16, %v143_v21  ;;  %1123 = vmatprep.subr.mxu0 %v143_v21  ;;  %v113_v26 = vsub.f32 %v111_v15, %v112_v20 }
   0xa   :  { %1117 = vmatprep.mubr.f32.mxu0 %v102_v19  ;;  %v103_v24 = vsub.f32 %v101_v14, %v102_v19  ;;  %v132_v27 = vand.u32 4294901760, %v131_v22  ;;  %v1228_v19 = vmov 920167782   ;;  %p1207_p3 = por %p1206_p2, %p1205_p1 }
   0xb   :  { %1118 = vmatmul.mubr.f32.vlgmr.msra.gmra.mrb[0].mxu0 %v112_v20  ;;  %v123_v28 = vsub.f32 %v121_v18, %v122_v23  ;;  %v145_v30 = vand.u32 4294901760, %v144_v25  ;;  %v114_v31 = vand.u32 4294901760, %v113_v26  ;;  %v1229_v26 = vmov 1326507024  }
   0xc   :  { %v104_v29 = vand.u32 4294901760, %v103_v24  ;;  %1120 = vmatprep.mubr.f32.mxu0 %v122_v23  ;;  %1124 = vmatpush3.msra.mxu0 %v143_v21  ;;  %v133_v32 = vsub.f32 %v131_v22, %v132_v27  ;;  %p1208_p4 = pnand %p1207_p3, %p1201_p0 }
   0xd   :  { %v124_v33 = vand.u32 4294901760, %v123_v28  ;;  %1131 = vmatprep.subr.mxu0 %v35_v8  ;;  %1099 = vmatprep.subr.mxu1 %v145_v30 }
   0xe   :  { %1093 = vmatprep.mubr.f32.mxu1 %v104_v29  ;;  %v134_v34 = vand.u32 4294901760, %v133_v32 }
   0xf   :  { %1094 = vmatmul.mubr.f32.vlgmr.msra.gmra.mrb[0].mxu1 %v114_v31  ;;  %1121 = vmatmul.mubr.f32.gmra.mrb[2].mxu0 %v132_v27 }
  0x10   :  { %1100 = vmatpush3.msra.mxu1 %v145_v30  ;;  %1096 = vmatprep.mubr.f32.mxu1 %v124_v33 }
  0x11   :  { %1125 = vmatprep.mubr.f32.mxu0 %v100_v9  ;;  %1107 = vmatprep.subr.mxu1 %v142_v16 }
  0x13   :  { %1097 = vmatmul.mubr.f32.gmra.mrb[2].mxu1 %v134_v34  ;;  %1126 = vmatmul.mubr.f32.vlgmr.msra.gmra.mrb[0].mxu0 %v110_v10 }
  0x14   :  { %1101 = vmatprep.mubr.f32.mxu1 %v100_v9  ;;  %1128 = vmatprep.mubr.f32.mxu0 %v120_v12 }
  0x15   :  { %1132 = vmatpush3.msra.mxu0 %v35_v8 }
  0x17   :  { %1102 = vmatmul.mubr.f32.vlgmr.msra.gmra.mrb[0].mxu1 %v110_v10  ;;  %1129 = vmatmul.mubr.f32.gmra.mrb[2].mxu0 %v130_v17 }
  0x18   :  { %1108 = vmatpush3.msra.mxu1 %v142_v16  ;;  %1104 = vmatprep.mubr.f32.mxu1 %v120_v12 }
  0x19   :  { %1133 = vmatprep.mubr.f32.mxu0 %v100_v9  ;;  %v1224_v9 = vmov 683565275  }
  0x1b   :  { %1105 = vmatmul.mubr.f32.gmra.mrb[2].mxu1 %v130_v17  ;;  %1134 = vmatmul.mubr.f32.vlgmr.msra.gmra.mrb[0].mxu0 %v110_v10 }
  0x1c   :  { %1109 = vmatprep.mubr.f32.mxu1 %v101_v14  ;;  %1136 = vmatprep.mubr.f32.mxu0 %v120_v12 }
  0x1f   :  { %1110 = vmatmul.mubr.f32.vlgmr.msra.gmra.mrb[0].mxu1 %v111_v15  ;;  %1137 = vmatmul.mubr.f32.gmra.mrb[2].mxu0 %v130_v17  ;;  %v1226_v15 = vmov 2131351028   ;;  %v1227_v17 = vmov 2102212464  }
  0x20   :  { %1112 = vmatprep.mubr.f32.mxu1 %v121_v18 }
  0x23   :  { %1113 = vmatmul.mubr.f32.gmra.mrb[2].mxu1 %v131_v22 }
  0xee   :  { %v1135_v35 = vpop.f32.mrb[0].mxu0 }
  0xef   :  { %v587_v36 = vpop.f32.mrb[1].mxu0 }
  0xf2   :  { %v1111_v37 = vpop.f32.mrb[0].mxu1  ;;  %v1138_v38 = vpop.f32.mrb[2].mxu0 }
  0xf3   :  { %v1263_v39 = vadd.f32 %v1135_v35, %v1111_v37  ;;  %v304_v40 = vpop.f32.mrb[1].mxu1  ;;  %v599_v41 = vpop.f32.mrb[3].mxu0 }
  0xf4   :  { %v1265_v42 = vadd.f32 %v587_v36, %v304_v40 }
  0xf5   :  { %v713_v43 = vand.u32 2147483647, %v1263_v39  ;;  %v716_v44 = vand.u32 2139095040, %v1263_v39  ;;  %vm715_vm15 = vcmp.lt.s32.totalorder %v1263_v39, 0 }
  0xf6   :  { %v609_v45 = vand.u32 2147483647, %v1265_v42  ;;  %v612_v46 = vand.u32 2139095040, %v1265_v42  ;;  %v1114_v47 = vpop.f32.mrb[2].mxu1 }
  0xf7   :  { %v717_v48 = vshrl.u32 %v716_v44, 23  ;;  %v1271_v49 = vadd.f32 %v1138_v38, %v1114_v47  ;;  %v318_v50 = vpop.f32.mrb[3].mxu1  ;;  %v720_v51 = vand.u32 8388607, %v713_v43  ;;  %vm1388_vm1 = vcmp.le.f32.partialorder %v713_v43, 0.7853982 }
  0xf8   :  { %v613_v52 = vshrl.u32 %v612_v46, 23  ;;  %v616_v53 = vand.u32 8388607, %v609_v45  ;;  %v1277_v54 = vadd.f32 %v599_v41, %v318_v50 }
  0xf9   :  { %v1049_v55 = vadd.s32 4294967169, %v717_v48  ;;  %v924_v57 = vand.u32 2139095040, %v1271_v49  ;;  %v721_v59 = vor.u32 8388608, %v720_v51  ;;  %v921_v7 = vand.u32 2147483647, %v1271_v49 }
  0xfa   :  { %v1045_v56 = vadd.s32 4294967169, %v613_v52  ;;  %v617_v60 = vor.u32 8388608, %v616_v53 }
  0xfb   :  { %v723_v58 = vadd.s32 1, %v1049_v55  ;;  %v925_v62 = vshrl.u32 %v924_v57, 23  ;;  %v1280_v4 = vshll.u32 %v721_v59, 8 }
  0xfc   :  { %v619_v61 = vadd.s32 1, %v1045_v56  ;;  %v1284_v6 = vshll.u32 %v617_v60, 8 }
  0xfd   :  { %vm724_vm2 = vcmp.gt.s32.totalorder %v723_v58, 0  ;;  %v1057_v0 = vadd.s32 4294967169, %v925_v62 }
  0xfe   :  { %v725_v63 = vsel %vm724_vm2, %v723_v58, 0  ;;  %vm620_vm3 = vcmp.gt.s32.totalorder %v619_v61, 0 }
  0xff   :  { %v726_v1 = vshrl.u32 %v725_v63, 5  ;;  %v727_v2 = vand.u32 31, %v725_v63  ;;  %v621_v3 = vsel %vm620_vm3, %v619_v61, 0  ;;  %v1288_v12 = vadd.s32 1, %v1057_v0 }
 0x100   :  { %v1282_v5 = vshrl.u32 %v621_v3, 5  ;;  %v623_v11 = vand.u32 31, %v621_v3 }
 0x101   :  { %v728_v8 = vsub.s32 32, %v727_v2  ;;  %v730_v10 = vshll.u32 %v1224_v9, %v727_v2  ;;  %v733_v14 = vshll.u32 %v1225_v13, %v727_v2  ;;  %v736_v16 = vshll.u32 %v1226_v15, %v727_v2 }
 0x102   :  { %v739_v18 = vshll.u32 %v1227_v17, %v727_v2  ;;  %v742_v20 = vshll.u32 %v1228_v19, %v727_v2  ;;  %vm745_vm4 = vcmp.lt.s32.totalorder %v726_v1, 1  ;;  %vm746_vm5 = vcmp.lt.s32.totalorder %v726_v1, 2 }
 0x103   :  { %v731_v21 = vshrl.u32 %v1225_v13, %v728_v8  ;;  %v734_v22 = vshrl.u32 %v1226_v15, %v728_v8  ;;  %v737_v23 = vshrl.u32 %v1227_v17, %v728_v8  ;;  %v729_v24 = vshrl.u32 %v1224_v9, %v728_v8 }
 0x104   :  { %v740_v25 = vshrl.u32 %v1228_v19, %v728_v8  ;;  %v743_v27 = vshrl.u32 %v1229_v26, %v728_v8  ;;  %v624_v31 = vsub.s32 32, %v623_v11  ;;  %vm747_vm6 = vcmp.lt.s32.totalorder %v726_v1, 3 }
 0x105   :  { %v732_v28 = vor.u32 %v731_v21, %v730_v10  ;;  %v735_v29 = vor.u32 %v734_v22, %v733_v14  ;;  %v738_v30 = vor.u32 %v737_v23, %v736_v16  ;;  %vm748_vm7 = vcmp.lt.s32.totalorder %v726_v1, 4 }
 0x106   :  { %v741_v32 = vor.u32 %v740_v25, %v739_v18  ;;  %v744_v33 = vor.u32 %v743_v27, %v742_v20  ;;  %v626_v44 = vshll.u32 %v1224_v9, %v623_v11  ;;  %v627_v48 = vshrl.u32 %v1225_v13, %v624_v31 }
 0x107   :  { %v749_v34 = vsel %vm745_vm4, %v729_v24, %v732_v28  ;;  %v750_v35 = vsel %vm748_vm7, %v738_v30, 2102212464  ;;  %v753_v36 = vsel %vm745_vm4, %v732_v28, %v735_v29  ;;  %v757_v37 = vsel %vm745_vm4, %v735_v29, %v738_v30 }
 0x108   :  { %v751_v38 = vsel %vm747_vm6, %v735_v29, %v750_v35  ;;  %v754_v40 = vsel %vm748_vm7, %v741_v32, 920167782  ;;  %v758_v41 = vsel %vm748_vm7, %v744_v33, 1326507024  ;;  %v629_v50 = vshll.u32 %v1225_v13, %v623_v11 }
 0x109   :  { %v755_v46 = vsel %vm747_vm6, %v738_v30, %v754_v40  ;;  %v759_v47 = vsel %vm747_vm6, %v741_v32, %v758_v41  ;;  %v752_v51 = vsel %vm746_vm5, %v749_v34, %v751_v38  ;;  %v630_v55 = vshrl.u32 %v1226_v15, %v624_v31 }
 0x10a   :  { %v756_v52 = vsel %vm746_vm5, %v753_v36, %v755_v46  ;;  %v760_v53 = vsel %vm746_vm5, %v757_v37, %v759_v47  ;;  %v628_v60 = vor.u32 %v627_v48, %v626_v44  ;;  %v632_v62 = vshll.u32 %v1226_v15, %v623_v11 }
 0x10b   :  { %v1311_v56 = vmul.u32.u64.low %v1280_v4, %v760_v53  ;;  %v1312_v57 = vmul.u32.u64.high %v1280_v4, %v760_v53, %v1311_v56  ;;  %v1315_v58 = vmul.u32.u64.low %v1280_v4, %v756_v52  ;;  %v1316_v59 = vmul.u32.u64.high %v1280_v4, %v756_v52, %v1315_v58 }
 0x10c   :  { %v631_v61 = vor.u32 %v630_v55, %v629_v50  ;;  %v633_v63 = vshrl.u32 %v1227_v17, %v624_v31  ;;  %v625_v0 = vshrl.u32 %v1224_v9, %v624_v31  ;;  %v635_v1 = vshll.u32 %v1227_v17, %v623_v11 }
 0x10d   :  { %v636_v2 = vshrl.u32 %v1228_v19, %v624_v31  ;;  %v639_v3 = vshrl.u32 %v1229_v26, %v624_v31  ;;  %v768_v8 = vmul.u32 %v1280_v4, %v752_v51  ;;  %v638_v14 = vshll.u32 %v1228_v19, %v623_v11 }
 0x10e   :  { %v634_v10 = vor.u32 %v633_v63, %v632_v62  ;;  %vm641_vm8 = vcmp.lt.s32.totalorder %v1282_v5, 1  ;;  %vm770_vm9 = vc.u32 %v1312_v57, %v1315_v58  ;;  %v771_v16 = vadd.s32 1, %v1316_v59 }
 0x10f   :  { %v637_v18 = vor.u32 %v636_v2, %v635_v1  ;;  %vm642_vm10 = vcmp.lt.s32.totalorder %v1282_v5, 2  ;;  %v640_v20 = vor.u32 %v639_v3, %v638_v14  ;;  %vm643_vm11 = vcmp.lt.s32.totalorder %v1282_v5, 3 }
 0x110   :  { %vm644_vm12 = vcmp.lt.s32.totalorder %v1282_v5, 4  ;;  %v649_v21 = vsel %vm641_vm8, %v628_v60, %v631_v61  ;;  %v772_v4 = vsel %vm770_vm9, %v771_v16, %v1316_v59  ;;  %v653_v23 = vsel %vm641_vm8, %v631_v61, %v634_v10 }
 0x111   :  { %v646_v22 = vsel %vm644_vm12, %v634_v10, 2102212464  ;;  %v650_v11 = vsel %vm644_vm12, %v637_v18, 920167782  ;;  %v773_v24 = vadd.s32 %v772_v4, %v768_v8  ;;  %v645_v25 = vsel %vm641_vm8, %v625_v0, %v628_v60 }
 0x112   :  { %v651_v27 = vsel %vm643_vm11, %v634_v10, %v650_v11  ;;  %v654_v28 = vsel %vm644_vm12, %v640_v20, 1326507024  ;;  %v647_v29 = vsel %vm643_vm11, %v631_v61, %v646_v22  ;;  %vm932_vm13 = vcmp.gt.s32.totalorder %v1288_v12, 0 }
 0x113   :  { %v652_v30 = vsel %vm642_vm10, %v649_v21, %v651_v27  ;;  %v655_v31 = vsel %vm643_vm11, %v637_v18, %v654_v28  ;;  %v774_v32 = vadd.s32 536870912, %v773_v24  ;;  %v928_v38 = vand.u32 8388607, %v921_v7 }
 0x114   :  { %v656_v33 = vsel %vm642_vm10, %v653_v23, %v655_v31  ;;  %v1341_v34 = vmul.u32.u64.low %v1284_v6, %v652_v30  ;;  %v1342_v35 = vmul.u32.u64.high %v1284_v6, %v652_v30, %v1341_v34  ;;  %v933_v40 = vsel %vm932_vm13, %v1288_v12, 0 }
 0x115   :  { %v1346_v36 = vmul.u32.u64.low %v1284_v6, %v656_v33  ;;  %v1347_v37 = vmul.u32.u64.high %v1284_v6, %v656_v33, %v1346_v36  ;;  %v1352_v41 = vshrl.u32 %v774_v32, 30  ;;  %v648_v44 = vsel %vm642_vm10, %v645_v25, %v647_v29 }
 0x116   :  { %v935_v46 = vand.u32 31, %v933_v40  ;;  %v667_v48 = vadd.s32 1, %v1342_v35  ;;  %v664_v50 = vmul.u32 %v1284_v6, %v648_v44  ;;  %v929_v51 = vor.u32 8388608, %v928_v38 }
 0x117   :  { %v776_v47 = vshll.u32 %v1352_v41, 30  ;;  %vm666_vm14 = vc.u32 %v1347_v37, %v1341_v34  ;;  %v820_v55 = vand.u32 2139095040, %v1277_v54  ;;  %v817_v59 = vand.u32 2147483647, %v1277_v54 }
 0x118   :  { %v936_v52 = vsub.s32 32, %v935_v46  ;;  %v668_v12 = vsel %vm666_vm14, %v667_v48, %v1342_v35  ;;  %v1366_v6 = vshll.u32 %v929_v51, 8  ;;  %v934_v8 = vshrl.u32 %v933_v40, 5 }
 0x119   :  { %v777_v53 = vsub.s32 %v773_v24, %v776_v47  ;;  %v669_v56 = vadd.s32 %v668_v12, %v664_v50  ;;  %v821_v2 = vshrl.u32 %v820_v55, 23  ;;  %v938_v10 = vshll.u32 %v1224_v9, %v935_v46 }
 0x11a   :  { %v939_v61 = vshrl.u32 %v1225_v13, %v936_v52  ;;  %v942_v62 = vshrl.u32 %v1226_v15, %v936_v52  ;;  %v945_v0 = vshrl.u32 %v1227_v17, %v936_v52  ;;  %v948_v1 = vshrl.u32 %v1228_v19, %v936_v52 }
 0x11b   :  { %v779_v5 = vsub.s32 0, %v777_v53  ;;  %v670_v60 = vadd.s32 536870912, %v669_v56  ;;  %v941_v14 = vshll.u32 %v1225_v13, %v935_v46  ;;  %v944_v18 = vshll.u32 %v1226_v15, %v935_v46 }
 0x11c   :  { %v947_v20 = vshll.u32 %v1227_v17, %v935_v46  ;;  %v951_v21 = vshrl.u32 %v1229_v26, %v936_v52  ;;  %v769_v4 = vadd.s32 %v1315_v58, %v1312_v57  ;;  %v940_v11 = vor.u32 %v939_v61, %v938_v10 }
 0x11d   :  { %v1050_v63 = vmin.u32 %v779_v5, %v777_v53  ;;  %v1370_v3 = vshrl.u32 %v670_v60, 30  ;;  %v943_v23 = vor.u32 %v942_v62, %v941_v14  ;;  %v946_v25 = vor.u32 %v945_v0, %v944_v18 }
 0x11e   :  { %v949_v27 = vor.u32 %v948_v1, %v947_v20  ;;  %v950_v28 = vshll.u32 %v1228_v19, %v935_v46  ;;  %v799_v29 = vsub.s32 4, %v1352_v41  ;;  %v937_v31 = vshrl.u32 %v1224_v9, %v936_v52 }
 0x11f   :  { %v781_v16 = vclz %v1050_v63  ;;  %v672_v22 = vshll.u32 %v1370_v3, 30  ;;  %vm953_vm0 = vcmp.lt.s32.totalorder %v934_v8, 1  ;;  %vm954_vm3 = vcmp.lt.s32.totalorder %v934_v8, 2 }
 0x120   :  { %v952_v58 = vor.u32 %v951_v21, %v950_v28  ;;  %vm955_vm4 = vcmp.lt.s32.totalorder %v934_v8, 3  ;;  %vm956_vm5 = vcmp.lt.s32.totalorder %v934_v8, 4  ;;  %v961_v35 = vsel %vm953_vm0, %v940_v11, %v943_v23 }
 0x121   :  { %v1051_v24 = vadd.s32 4294967294, %v781_v16  ;;  %v1383_v30 = vsub.s32 %v669_v56, %v672_v22  ;;  %v958_v40 = vsel %vm956_vm5, %v946_v25, 2102212464  ;;  %v962_v44 = vsel %vm956_vm5, %v949_v27, 920167782 }
 0x122   :  { %v963_v47 = vsel %vm955_vm4, %v946_v25, %v962_v44  ;;  %v965_v48 = vsel %vm953_vm0, %v943_v23, %v946_v25  ;;  %v966_v12 = vsel %vm956_vm5, %v952_v58, 1326507024  ;;  %vm611_vm6 = vcmp.lt.s32.totalorder %v1265_v42, 0 }
 0x123   :  { %vm1052_vm2 = vcmp.lt.s32.totalorder %v1051_v24, 0  ;;  %v675_v33 = vsub.s32 0, %v1383_v30  ;;  %v964_v52 = vsel %vm954_vm3, %v961_v35, %v963_v47  ;;  %v957_v56 = vsel %vm953_vm0, %v937_v31, %v940_v11 }
 0x124   :  { %v784_v32 = vsel %vm1052_vm2, 0, %v1051_v24  ;;  %v959_v5 = vsel %vm955_vm4, %v943_v23, %v958_v40  ;;  %v1053_v60 = vadd.s32 4294967169, %v821_v2  ;;  %v800_v62 = vsel %vm715_vm15, %v799_v29, %v1352_v41 }
 0x125   :  { %v785_v36 = vsub.s32 32, %v784_v32  ;;  %v789_v38 = vsub.s32 4294967266, %v784_v32  ;;  %v786_v46 = vshll.u32 %v777_v53, %v784_v32  ;;  %v1046_v43 = vmin.u32 %v675_v33, %v1383_v30 }
 0x126   :  { %v967_v63 = vsel %vm955_vm4, %v949_v27, %v966_v12  ;;  %v1407_v10 = vmul.u32.u64.low %v1366_v6, %v964_v52  ;;  %v1408_v14 = vmul.u32.u64.high %v1366_v6, %v964_v52, %v1407_v10  ;;  %v960_v18 = vsel %vm954_vm3, %v957_v56, %v959_v5 }
 0x127   :  { %v787_v50 = vshrl.u32 %v769_v4, %v785_v36  ;;  %v790_v51 = vadd.s32 127, %v789_v38  ;;  %v677_v55 = vclz %v1046_v43  ;;  %v968_v1 = vsel %vm954_vm3, %v965_v48, %v967_v63 }
 0x128   :  { %v1413_v2 = vmul.u32.u64.low %v1366_v6, %v968_v1  ;;  %v1414_v20 = vmul.u32.u64.high %v1366_v6, %v968_v1, %v1413_v2  ;;  %v802_v41 = vsel %vm1388_vm1, 0, %v800_v62  ;;  %v665_v21 = vadd.s32 %v1341_v34, %v1347_v37 }
 0x129   :  { %v788_v53 = vor.u32 %v787_v50, %v786_v46  ;;  %v791_v61 = vshll.u32 %v790_v51, 23  ;;  %v1047_v0 = vadd.s32 4294967294, %v677_v55  ;;  %v827_v4 = vadd.s32 1, %v1053_v60 }
 0x12a   :  { %v695_v24 = vsub.s32 4, %v1370_v3  ;;  %v976_v27 = vmul.u32 %v1366_v6, %v960_v18  ;;  %v979_v28 = vadd.s32 1, %v1408_v14  ;;  %vm978_vm8 = vc.u32 %v1414_v20, %v1407_v10 }
 0x12b   :  { %v792_v16 = vor.u32 4788187, %v791_v61  ;;  %vm1048_vm7 = vcmp.lt.s32.totalorder %v1047_v0, 0  ;;  %v795_v11 = vcvt.s32.f32 %v788_v53  ;;  %vm828_vm9 = vcmp.gt.s32.totalorder %v827_v4, 0 }
 0x12c   :  { %v680_v23 = vsel %vm1048_vm7, 0, %v1047_v0  ;;  %v980_v58 = vsel %vm978_vm8, %v979_v28, %v1408_v14  ;;  %v829_v32 = vsel %vm828_vm9, %v827_v4, 0  ;;  %v696_v35 = vsel %vm611_vm6, %v695_v24, %v1370_v3 }
 0x12d   :  { %v793_v22 = vand.u32 2147483647, %v792_v16  ;;  %v681_v25 = vsub.s32 32, %v680_v23  ;;  %v685_v8 = vsub.s32 4294967266, %v680_v23  ;;  %v682_v31 = vshll.u32 %v1383_v30, %v680_v23 }
 0x12e   :  { %v981_v6 = vadd.s32 %v980_v58, %v976_v27  ;;  %v831_v36 = vand.u32 31, %v829_v32  ;;  %v806_v38 = vadd.s32 3, %v802_v41  ;;  %vm1434_vm10 = vcmp.le.f32.partialorder %v609_v45, 0.7853982 }
 0x12f   :  { %v796_v29 = vmul.f32 %v795_v11, %v793_v22  ;;  %v683_v34 = vshrl.u32 %v665_v21, %v681_v25  ;;  %v686_v37 = vadd.s32 127, %v685_v8  ;;  %v698_v50 = vsel %vm1434_vm10, 0, %v696_v35 }
 0x130   :  { %v982_v43 = vadd.s32 536870912, %v981_v6  ;;  %v832_v47 = vsub.s32 32, %v831_v36  ;;  %v824_v52 = vand.u32 8388607, %v817_v59  ;;  %v807_v45 = vand.u32 3, %v806_v38 }
 0x131   :  { %v797_v33 = vxor.u32 2147483648, %v796_v29  ;;  %v684_v40 = vor.u32 %v683_v34, %v682_v31  ;;  %v687_v44 = vshll.u32 %v686_v37, 23  ;;  %v702_v56 = vadd.s32 3, %v698_v50 }
 0x132   :  { %v1443_v51 = vshrl.u32 %v982_v43, 30  ;;  %v835_v57 = vshrl.u32 %v1225_v13, %v832_v47  ;;  %v838_v60 = vshrl.u32 %v1226_v15, %v832_v47  ;;  %v841_v61 = vshrl.u32 %v1227_v17, %v832_v47 }
 0x133   :  { %v798_v30 = vsel %vm715_vm15, %v797_v33, %v796_v29  ;;  %v688_v48 = vor.u32 4788187, %v687_v44  ;;  %v691_v55 = vcvt.s32.f32 %v684_v40  ;;  %v843_v62 = vshll.u32 %v1227_v17, %v831_v36 }
 0x134   :  { %v801_v3 = vsel %vm1388_vm1, %v1263_v39, %v798_v30  ;;  %v984_v5 = vshll.u32 %v1443_v51, 30  ;;  %v844_v63 = vshrl.u32 %v1228_v19, %v832_v47  ;;  %v1455_v1 = vshrl.u32 %v829_v32, 5 }
 0x135   :  { %1184 = vcosq.f32 %v801_v3  ;;  %v689_v12 = vand.u32 2147483647, %v688_v48  ;;  %v834_v14 = vshll.u32 %v1224_v9, %v831_v36  ;;  %v837_v16 = vshll.u32 %v1225_v13, %v831_v36 }
 0x136   :  { %1186 = vsinq.f32 %v801_v3  ;;  %v1453_v0 = vsub.s32 %v981_v6, %v984_v5  ;;  %vm809_vm11 = vcmp.eq.s32.totalorder %v807_v45, 0  ;;  %v840_v2 = vshll.u32 %v1226_v15, %v831_v36 }
 0x137   :  { %v692_v53 = vmul.f32 %v691_v55, %v689_v12  ;;  %v845_v41 = vor.u32 %v844_v63, %v843_v62  ;;  %v847_v21 = vshrl.u32 %v1229_v26, %v832_v47  ;;  %vm808_vm12 = vcmp.lt.s32.totalorder %v807_v45, 2 }
 0x138   :  { %vm812_vm13 = vcmp.eq.s32.totalorder %v807_v45, 2  ;;  %v987_v17 = vsub.s32 0, %v1453_v0  ;;  %v825_v4 = vor.u32 8388608, %v824_v52  ;;  %v836_v22 = vor.u32 %v835_v57, %v834_v14 }
 0x139   :  { %v693_v18 = vxor.u32 2147483648, %v692_v53  ;;  %vm805_vm14 = vweird.f32 %v1263_v39  ;;  %v839_v23 = vor.u32 %v838_v60, %v837_v16  ;;  %v842_v13 = vor.u32 %v841_v61, %v840_v2 }
 0x13a   :  { %v846_v24 = vshll.u32 %v1228_v19, %v831_v36  ;;  %v1469_v26 = vand.u32 3, %v702_v56  ;;  %v1058_v25 = vmin.u32 %v987_v17, %v1453_v0  ;;  %vm852_vm15 = vcmp.lt.s32.totalorder %v1455_v1, 4 }
 0x13b   :  { %v694_v11 = vsel %vm611_vm6, %v693_v18, %v692_v53  ;;  %v977_v8 = vadd.s32 %v1407_v10, %v1414_v20  ;;  %v858_v28 = vsel %vm852_vm15, %v845_v41, 920167782  ;;  %vm849_vm0 = vcmp.lt.s32.totalorder %v1455_v1, 1 }
 0x13c   :  { %v697_v15 = vsel %vm1434_vm10, %v1265_v42, %v694_v11  ;;  %v848_v27 = vor.u32 %v847_v21, %v846_v24  ;;  %v989_v19 = vclz %v1058_v25  ;;  %vm851_vm1 = vcmp.lt.s32.totalorder %v1455_v1, 3 }
 0x13d   :  { %1188 = vcosq.f32 %v697_v15  ;;  %v857_v37 = vsel %vm849_vm0, %v836_v22, %v839_v23  ;;  %v859_v58 = vsel %vm851_vm1, %v842_v13, %v858_v28  ;;  %v865_v10 = vshll.u32 %v825_v4, 8 }
 0x13e   :  { %1190 = vsinq.f32 %v697_v15  ;;  %v1059_v32 = vadd.s32 4294967294, %v989_v19  ;;  %v833_v33 = vshrl.u32 %v1224_v9, %v832_v47  ;;  %vm850_vm2 = vcmp.lt.s32.totalorder %v1455_v1, 2 }
 0x13f   :  { %v1185_v29 = vpop.eup %1184  ;;  %v854_v6 = vsel %vm852_vm15, %v842_v13, 2102212464  ;;  %v861_v36 = vsel %vm849_vm0, %v839_v23, %v842_v13  ;;  %v862_v38 = vsel %vm852_vm15, %v848_v27, 1326507024  ;;  %v860_v44 = vsel %vm850_vm2, %v857_v37, %v859_v58 }
 0x140   :  { %v1187_v31 = vpop.eup %1186  ;;  %v813_v34 = vxor.u32 2147483648, %v1185_v29  ;;  %vm1060_vm3 = vcmp.lt.s32.totalorder %v1059_v32, 0  ;;  %v863_v9 = vsel %vm851_vm1, %v845_v41, %v862_v38  ;;  %v853_v43 = vsel %vm849_vm0, %v833_v33, %v836_v22 }
 0x141   :  { %v810_v20 = vxor.u32 2147483648, %v1187_v31  ;;  %v992_v46 = vsel %vm1060_vm3, 0, %v1059_v32  ;;  %v864_v47 = vsel %vm850_vm2, %v861_v36, %v863_v9  ;;  %v855_v52 = vsel %vm851_vm1, %v839_v23, %v854_v6 }
 0x142   :  { %v814_v35 = vsel %vm812_vm13, %v813_v34, %v1187_v31  ;;  %v993_v48 = vsub.s32 32, %v992_v46  ;;  %v997_v50 = vsub.s32 4294967266, %v992_v46  ;;  %v994_v5 = vshll.u32 %v1453_v0, %v992_v46 }
 0x143   :  { %v811_v40 = vsel %vm809_vm11, %v1185_v29, %v810_v20  ;;  %v1506_v12 = vmul.u32.u64.low %v865_v10, %v864_v47  ;;  %v1507_v55 = vmul.u32.u64.high %v865_v10, %v864_v47, %v1506_v12  ;;  %v856_v39 = vsel %vm850_vm2, %v853_v43, %v855_v52 }
 0x144   :  { %v815_v30 = vsel %vm808_vm12, %v811_v40, %v814_v35  ;;  %v1509_v45 = vmul.u32.u64.low %v865_v10, %v860_v44  ;;  %v1510_v56 = vmul.u32.u64.high %v865_v10, %v860_v44, %v1509_v45  ;;  %v995_v57 = vshrl.u32 %v977_v8, %v993_v48 }
 0x145   :  { %v816_v3 = vsel %vm805_vm14, nan, %v815_v30  ;;  %v998_v60 = vadd.s32 127, %v997_v50  ;;  %vm708_vm4 = vcmp.eq.s32.totalorder %v1469_v26, 2  ;;  %vm705_vm6 = vcmp.eq.s32.totalorder %v1469_v26, 0 }
 0x146   :  { %1026 = vst [vmem:[#allocation2 + $0x8] sm:$0xff] %v816_v3  ;;  %v996_v63 = vor.u32 %v995_v57, %v994_v5  ;;  %vm874_vm5 = vc.u32 %v1507_v55, %v1509_v45  ;;  %v875_v18 = vadd.s32 1, %v1510_v56  ;;  %v872_v41 = vmul.u32 %v865_v10, %v856_v39 }
 0x147   :  { %v1189_v53 = vpop.eup %1188  ;;  %v999_v14 = vshll.u32 %v998_v60, 23  ;;  %vm701_vm7 = vweird.f32 %v1265_v42  ;;  %vm704_vm8 = vcmp.lt.s32.totalorder %v1469_v26, 2  ;;  %v1007_v13 = vsub.s32 4, %v1443_v51 }
 0x148   :  { %v1191_v61 = vpop.eup %1190  ;;  %v709_v62 = vxor.u32 2147483648, %v1189_v53  ;;  %v876_v21 = vsel %vm874_vm5, %v875_v18, %v1510_v56  ;;  %v1003_v22 = vcvt.s32.f32 %v996_v63  ;;  %vm923_vm9 = vcmp.lt.s32.totalorder %v1271_v49, 0 }
 0x149   :  { %v706_v16 = vxor.u32 2147483648, %v1191_v61  ;;  %v1000_v2 = vor.u32 4788187, %v999_v14  ;;  %v877_v11 = vadd.s32 %v876_v21, %v872_v41  ;;  %v1008_v42 = vsel %vm923_vm9, %v1007_v13, %v1443_v51 }
 0x14a   :  { %v710_v0 = vsel %vm708_vm4, %v709_v62, %v1191_v61  ;;  %vm922_vm10 = vcmp.le.f32.partialorder %v921_v7, 0.7853982  ;;  %v873_v6 = vadd.s32 %v1509_v45, %v1507_v55  ;;  %vm1013_vm15 = vweird.f32 %v1271_v49 }
 0x14b   :  { %v707_v1 = vsel %vm705_vm6, %v1189_v53, %v706_v16  ;;  %v1001_v4 = vand.u32 2147483647, %v1000_v2  ;;  %v878_v15 = vadd.s32 536870912, %v877_v11  ;;  %v1010_v29 = vsel %vm922_vm10, 0, %v1008_v42 }
 0x14c   :  { %v711_v17 = vsel %vm704_vm8, %v707_v1, %v710_v0  ;;  %v1014_v34 = vadd.s32 3, %v1010_v29  ;;  %vm819_vm0 = vcmp.lt.s32.totalorder %v1277_v54, 0  ;;  %vm818_vm1 = vcmp.le.f32.partialorder %v817_v59, 0.7853982 }
 0x14d   :  { %v712_v23 = vsel %vm701_vm7, nan, %v711_v17  ;;  %v1004_v24 = vmul.f32 %v1003_v22, %v1001_v4  ;;  %v879_v8 = vshrl.u32 %v878_v15, 30  ;;  %vm909_vm5 = vweird.f32 %v1277_v54 }
 0x14e   :  { %1025 = vst [vmem:[#allocation2] sm:$0xff] %v712_v23  ;;  %v1015_v10 = vand.u32 3, %v1014_v34 }
 0x14f   :  { %v1005_v25 = vxor.u32 2147483648, %v1004_v24  ;;  %v880_v27 = vshll.u32 %v879_v8, 30  ;;  %v903_v45 = vsub.s32 4, %v879_v8 }
 0x150   :  { %vm1020_vm12 = vcmp.eq.s32.totalorder %v1015_v10, 2  ;;  %vm1016_vm13 = vcmp.lt.s32.totalorder %v1015_v10, 2  ;;  %vm1017_vm14 = vcmp.eq.s32.totalorder %v1015_v10, 0 }
 0x151   :  { %v1006_v26 = vsel %vm923_vm9, %v1005_v25, %v1004_v24  ;;  %v881_v19 = vsub.s32 %v877_v11, %v880_v27  ;;  %v904_v57 = vsel %vm819_vm0, %v903_v45, %v879_v8 }
 0x152   :  { %v1009_v28 = vsel %vm922_vm10, %v1271_v49, %v1006_v26  ;;  %v906_v60 = vsel %vm818_vm1, 0, %v904_v57 }
 0x153   :  { %1192 = vcosq.f32 %v1009_v28  ;;  %v883_v31 = vsub.s32 0, %v881_v19  ;;  %v910_v53 = vadd.s32 3, %v906_v60 }
 0x154   :  { %1194 = vsinq.f32 %v1009_v28 }
 0x155   :  { %v1054_v37 = vmin.u32 %v883_v31, %v881_v19  ;;  %v911_v39 = vand.u32 3, %v910_v53 }
 0x157   :  { %v885_v58 = vclz %v1054_v37  ;;  %vm916_vm2 = vcmp.eq.s32.totalorder %v911_v39, 2  ;;  %vm913_vm3 = vcmp.eq.s32.totalorder %v911_v39, 0  ;;  %vm912_vm4 = vcmp.lt.s32.totalorder %v911_v39, 2 }
 0x159   :  { %v1055_v20 = vadd.s32 4294967294, %v885_v58 }
 0x15b   :  { %vm1056_vm11 = vcmp.lt.s32.totalorder %v1055_v20, 0 }
 0x15c   :  { %v888_v7 = vsel %vm1056_vm11, 0, %v1055_v20 }
 0x15d   :  { %v1193_v32 = vpop.eup %1192  ;;  %v889_v36 = vsub.s32 32, %v888_v7  ;;  %v893_v38 = vsub.s32 4294967266, %v888_v7  ;;  %v890_v9 = vshll.u32 %v881_v19, %v888_v7 }
 0x15e   :  { %v1195_v51 = vpop.eup %1194  ;;  %v1021_v33 = vxor.u32 2147483648, %v1193_v32 }
 0x15f   :  { %v1018_v35 = vxor.u32 2147483648, %v1195_v51  ;;  %v891_v30 = vshrl.u32 %v873_v6, %v889_v36  ;;  %v894_v46 = vadd.s32 127, %v893_v38 }
 0x160   :  { %v1022_v40 = vsel %vm1020_vm12, %v1021_v33, %v1195_v51 }
 0x161   :  { %v1019_v44 = vsel %vm1017_vm14, %v1193_v32, %v1018_v35  ;;  %v892_v3 = vor.u32 %v891_v30, %v890_v9  ;;  %v895_v48 = vshll.u32 %v894_v46, 23 }
 0x162   :  { %v1023_v43 = vsel %vm1016_vm13, %v1019_v44, %v1022_v40 }
 0x163   :  { %v1024_v47 = vsel %vm1013_vm15, nan, %v1023_v43  ;;  %v896_v50 = vor.u32 4788187, %v895_v48  ;;  %v899_v12 = vcvt.s32.f32 %v892_v3 }
 0x164   :  { %1028 = vst [vmem:[#allocation2 + $0x18] sm:$0xff] %v1024_v47 }
 0x165   :  { %v897_v52 = vand.u32 2147483647, %v896_v50 }
 0x167   :  { %v900_v55 = vmul.f32 %v899_v12, %v897_v52 }
 0x169   :  { %v901_v56 = vxor.u32 2147483648, %v900_v55 }
 0x16b   :  { %v902_v5 = vsel %vm819_vm0, %v901_v56, %v900_v55 }
 0x16c   :  { %v905_v49 = vsel %vm818_vm1, %v1277_v54, %v902_v5 }
 0x16d   :  { %1196 = vcosq.f32 %v905_v49 }
 0x16e   :  { %1198 = vsinq.f32 %v905_v49 }
 0x177   :  { %v1197_v61 = vpop.eup %1196 }
 0x178   :  { %v1199_v62 = vpop.eup %1198  ;;  %v917_v63 = vxor.u32 2147483648, %v1197_v61 }
 0x179   :  { %v914_v14 = vxor.u32 2147483648, %v1199_v62 }
 0x17a   :  { %v918_v16 = vsel %vm916_vm2, %v917_v63, %v1199_v62 }
 0x17b   :  { %v915_v59 = vsel %vm913_vm3, %v1197_v61, %v914_v14 }
 0x17c   :  { %v919_v18 = vsel %vm912_vm4, %v915_v59, %v918_v16 }
 0x17d   :  { %v920_v0 = vsel %vm909_vm5, nan, %v919_v18 }
 0x17e   :  { %1027 = vst [vmem:[#allocation2 + $0x10] sm:$0xff] %v920_v0 }
 0x17f   :  { %1211 = shalt.err (!%p1208_p4)
}
 0x180   :  { %s1212_s22 = scalar_lea.hbm %s1549_s2, 512 }
 0x181   :  { %p1213_p5 = scmp.ne.s32.totalorder %s1549_s2, %s1212_s22  ;;  %p1216_p6 = scmp.lt.u32.totalorder %s1212_s22, %s1549_s2 }
 0x183   :  { %p1218_p7 = pnand %p1216_p6, %p1213_p5 }
 0x185   :  { %1221 = shalt.err (!%p1218_p7)
}
 0x186   :  { %s1231_s27 = smov 128   ;;  %s1232_s28 = smov 8  }
 0x187   :  { %1040 = dma.vmem_to_hbm [thread:$0]  %s1035_s1, 512, %s1549_s2, [#allocation3], %s1231_s27, %s1231_s27, %s1232_s28  }
 0x188   :  { %1222 = dma.done.wait [#allocation3], 512  }
 0x189   :  { %1223 = vsyncadd [#allocation3], 4294966784 }
 0x18a   :  { %1044 = vsyncpa [#allocation3], 1 }

</bundles_post_ra>
